<compile_context>
chip_gen: v7x
topology: tpu7x:2x2x1
jax: 0.10.0
libtpu: 0.0.40
codegen_flags: <defaults>
</compile_context>

<pallas_src>
import functools
import math

import jax
import jax.numpy as jnp
from jax import lax
from jax.experimental import pallas as pl
from jax.experimental.pallas import tpu as pltpu


def _mha_global_space_kernel(q_ref, k_ref, v_ref, o_ref, *, num_heads_total,
                             head_dim, scale):
    """One query-row tile of multi-head attention.

    q_ref: (tq, D), k_ref/v_ref: (M, D), o_ref: (tq, D), all resident in VMEM.
    Heads are statically unrolled d-wide column slices of the in-register
    tiles; results are concatenated and stored with one full-width write.
    """
    H, d = num_heads_total, head_dim

    # Hoisted full-tile loads; Q pre-scaled once so the score matmul output
    # needs no extra multiply.
    q = q_ref[...].astype(jnp.float32) * scale   # (tq, D)
    k = k_ref[...].astype(jnp.float32)           # (M,  D)
    v = v_ref[...].astype(jnp.float32)           # (M,  D)

    ys = []
    for h in range(H):  # static unroll (H = 4 * num_heads, small)
        lo = h * d
        q_h = q[:, lo:lo + d]                    # (tq, d)
        k_h = k[:, lo:lo + d]                    # (M,  d)
        v_h = v[:, lo:lo + d]                    # (M,  d)

        # scores (tq, M): contract the d axis of both operands directly
        # (no materialized k.T / relayout before the MXU push).
        s = lax.dot_general(
            q_h, k_h,
            dimension_numbers=(((1,), (1,)), ((), ())),
            preferred_element_type=jnp.float32,
        )

        # numerically-stable softmax over the key axis, exact f32 arithmetic.
        s = s - jnp.max(s, axis=-1, keepdims=True)
        p = jnp.exp(s)
        p = p / jnp.sum(p, axis=-1, keepdims=True)

        ys.append(jnp.dot(p, v_h, preferred_element_type=jnp.float32))

    # One lane-dense (tq, D) store instead of H masked width-d stripe stores.
    o_ref[...] = jnp.concatenate(ys, axis=-1).astype(o_ref.dtype)


def multi_head_attention_global_space(query, key, value, *, num_heads):
    """Equivalent of MultiHeadAttention_GlobalSpace(hidden_dim, num_heads, T).forward."""
    H = 4 * num_heads
    N, D = query.shape
    M, Dk = key.shape
    assert D % H == 0, "hidden_dim must be divisible by 4 * num_heads"
    assert Dk == D and value.shape == (M, D)
    d = D // H
    scale = 1.0 / math.sqrt(d)

    # VMEM guardrail: K/V plus a full (tq, M) f32 score matrix stay resident.
    # Keep well inside scoped VMEM (v7x only has 64 MiB physical).
    # TODO(synk): flash-style online-softmax fallback for very long sequences.
    resident_bytes = (N + 3 * M) * D * 4 + N * M * 4
    if resident_bytes > (8 << 20):
        raise NotImplementedError(
            "sequences too long for the fully-resident kernel; needs a "
            "flash-style online-softmax restructure")

    # Query-row tiling: tq=8 gives at least two grid steps at small N so the
    # "parallel" axis shards across v7x's two TensorCores; blocks remain
    # (8, .)-aligned.  Falls back to a single block when N is not 8-aligned.
    tq = 8 if (N % 8 == 0 and N > 8) else N
    grid = (N // tq,)

    kernel = functools.partial(
        _mha_global_space_kernel,
        num_heads_total=H,
        head_dim=d,
        scale=scale,
    )

    itemsize = jnp.dtype(query.dtype).itemsize
    cost = pl.CostEstimate(
        flops=2 * 2 * H * N * M * d,                 # QK^T + PV
        transcendentals=H * N * M,                   # exp
        bytes_accessed=(2 * N * D + 2 * M * D) * itemsize,
    )

    return pl.pallas_call(
        kernel,
        out_shape=jax.ShapeDtypeStruct((N, D), query.dtype),
        grid_spec=pltpu.PrefetchScalarGridSpec(
            num_scalar_prefetch=0,
            grid=grid,
            in_specs=[
                pl.BlockSpec((tq, D), lambda i: (i, 0)),
                pl.BlockSpec((M, D), lambda i: (0, 0)),  # constant block index
                pl.BlockSpec((M, D), lambda i: (0, 0)),  # -> stays resident
            ],
            out_specs=pl.BlockSpec((tq, D), lambda i: (i, 0)),
        ),
        compiler_params=pltpu.CompilerParams(
            dimension_semantics=("parallel",)),
        cost_estimate=cost,
    )(query, key, value)


def _reference(query, key, value, *, num_heads):
    # pure-JAX mirror of the PyTorch forward for verification
    H = 4 * num_heads
    N, D = query.shape
    M = key.shape[0]
    d = D // H
    q = query.reshape(N, H, d).transpose(1, 0, 2)
    k = key.reshape(M, H, d).transpose(1, 0, 2)
    v = value.reshape(M, H, d).transpose(1, 0, 2)
    att = jnp.einsum("hnd,hmd->hnm", q, k) * (1.0 / math.sqrt(d))
    att = jax.nn.softmax(att, axis=-1)
    y = jnp.einsum("hnm,hmd->hnd", att, v)
    return y.transpose(1, 0, 2).reshape(N, D)


if __name__ == "__main__":
    # module config: hidden_dim=64, num_heads=2 -> H = 8 heads, head_dim = 8
    hidden_dim = 64
    num_heads = 2
    n_time_sequence = 8  # unused by forward (kept for parity with __init__)

    N = 16   # number of query tokens
    M = 16   # number of key/value tokens

    key_rng = jax.random.PRNGKey(0)
    kq, kk, kv = jax.random.split(key_rng, 3)
    query = jax.random.normal(kq, (N, hidden_dim), dtype=jnp.float32)
    key_ = jax.random.normal(kk, (M, hidden_dim), dtype=jnp.float32)
    value = jax.random.normal(kv, (M, hidden_dim), dtype=jnp.float32)

    out = multi_head_attention_global_space(query, key_, value, num_heads=num_heads)
    out = jax.block_until_ready(out)

    ref = _reference(query, key_, value, num_heads=num_heads)
    assert out.shape == (N, hidden_dim)
    assert jnp.allclose(out, ref, atol=1e-5, rtol=1e-5), (
        float(jnp.max(jnp.abs(out - ref)))
    )

    print("KERNEL_OK")
</pallas_src>

<mosaic_0001>
module attributes {stable_mosaic.version = 11 : i64} {
  func.func @_mha_global_space_kernel(%arg0: i32, %arg1: memref<8x64xf32, #tpu.memory_space<vmem>>, %arg2: memref<16x64xf32, #tpu.memory_space<vmem>>, %arg3: memref<16x64xf32, #tpu.memory_space<vmem>>, %arg4: memref<8x64xf32, #tpu.memory_space<vmem>>) attributes {dimension_semantics = [#tpu.dimension_semantics<parallel>], iteration_bounds = array<i64: 2>, scalar_prefetch = 0 : i64, scratch_operands = 0 : i64, tpu.core_type = #tpu.core_type<tc>, window_params = [{transform_indices = @transform_0, window_bounds = array<i64: 8, 64>}, {pipeline_mode = #tpu.pipeline_mode<synchronous>, transform_indices = @transform_1, window_bounds = array<i64: 16, 64>}, {pipeline_mode = #tpu.pipeline_mode<synchronous>, transform_indices = @transform_2, window_bounds = array<i64: 16, 64>}, {transform_indices = @transform_3, window_bounds = array<i64: 8, 64>}]} {
    %c0 = arith.constant 0 : index
    %c0_0 = arith.constant 0 : index
    %0 = vector.load %arg1[%c0, %c0_0] : memref<8x64xf32, #tpu.memory_space<vmem>>, vector<8x64xf32>
    %cst = arith.constant 0.353553385 : f32
    %1 = vector.broadcast %cst : f32 to vector<8x64xf32>
    %2 = arith.mulf %0, %1 : vector<8x64xf32>
    %c0_1 = arith.constant 0 : index
    %c0_2 = arith.constant 0 : index
    %3 = vector.load %arg2[%c0_1, %c0_2] : memref<16x64xf32, #tpu.memory_space<vmem>>, vector<16x64xf32>
    %c0_3 = arith.constant 0 : index
    %c0_4 = arith.constant 0 : index
    %4 = vector.load %arg3[%c0_3, %c0_4] : memref<16x64xf32, #tpu.memory_space<vmem>>, vector<16x64xf32>
    %5 = vector.extract_strided_slice %2 {offsets = [0, 0], sizes = [8, 8], strides = [1, 1]} : vector<8x64xf32> to vector<8x8xf32>
    %6 = vector.extract_strided_slice %3 {offsets = [0, 0], sizes = [16, 8], strides = [1, 1]} : vector<16x64xf32> to vector<16x8xf32>
    %7 = vector.extract_strided_slice %4 {offsets = [0, 0], sizes = [16, 8], strides = [1, 1]} : vector<16x64xf32> to vector<16x8xf32>
    %cst_5 = arith.constant dense<0.000000e+00> : vector<8x16xf32>
    %8 = tpu.matmul %5, %6, %cst_5 {dimension_numbers = #tpu.dot_dimension_numbers<[1], [1], [0], [0], [0, 0, 1, 0], [], []>} : vector<8x8xf32>, vector<16x8xf32>, vector<8x16xf32> -> vector<8x16xf32>
    %cst_6 = arith.constant dense<0xFF800000> : vector<8xf32>
    %9 = vector.multi_reduction <maximumf>, %8, %cst_6 [1] : vector<8x16xf32> to vector<8xf32>
    %10 = vector.shape_cast %9 : vector<8xf32> to vector<8x1xf32>
    %11 = vector.broadcast %10 : vector<8x1xf32> to vector<8x16xf32>
    %12 = arith.subf %8, %11 : vector<8x16xf32>
    %13 = math.exp %12 : vector<8x16xf32>
    %cst_7 = arith.constant dense<0.000000e+00> : vector<8xf32>
    %14 = vector.multi_reduction <add>, %13, %cst_7 [1] : vector<8x16xf32> to vector<8xf32>
    %15 = vector.shape_cast %14 : vector<8xf32> to vector<8x1xf32>
    %16 = vector.broadcast %15 : vector<8x1xf32> to vector<8x16xf32>
    %17 = arith.divf %13, %16 : vector<8x16xf32>
    %cst_8 = arith.constant dense<0.000000e+00> : vector<8x8xf32>
    %18 = tpu.matmul %17, %7, %cst_8 {dimension_numbers = #tpu.dot_dimension_numbers<[1], [0], [0], [1], [0, 0, 1, 1], [], []>} : vector<8x16xf32>, vector<16x8xf32>, vector<8x8xf32> -> vector<8x8xf32>
    %19 = vector.extract_strided_slice %2 {offsets = [0, 8], sizes = [8, 8], strides = [1, 1]} : vector<8x64xf32> to vector<8x8xf32>
    %20 = vector.extract_strided_slice %3 {offsets = [0, 8], sizes = [16, 8], strides = [1, 1]} : vector<16x64xf32> to vector<16x8xf32>
    %21 = vector.extract_strided_slice %4 {offsets = [0, 8], sizes = [16, 8], strides = [1, 1]} : vector<16x64xf32> to vector<16x8xf32>
    %cst_9 = arith.constant dense<0.000000e+00> : vector<8x16xf32>
    %22 = tpu.matmul %19, %20, %cst_9 {dimension_numbers = #tpu.dot_dimension_numbers<[1], [1], [0], [0], [0, 0, 1, 0], [], []>} : vector<8x8xf32>, vector<16x8xf32>, vector<8x16xf32> -> vector<8x16xf32>
    %cst_10 = arith.constant dense<0xFF800000> : vector<8xf32>
    %23 = vector.multi_reduction <maximumf>, %22, %cst_10 [1] : vector<8x16xf32> to vector<8xf32>
    %24 = vector.shape_cast %23 : vector<8xf32> to vector<8x1xf32>
    %25 = vector.broadcast %24 : vector<8x1xf32> to vector<8x16xf32>
    %26 = arith.subf %22, %25 : vector<8x16xf32>
    %27 = math.exp %26 : vector<8x16xf32>
    %cst_11 = arith.constant dense<0.000000e+00> : vector<8xf32>
    %28 = vector.multi_reduction <add>, %27, %cst_11 [1] : vector<8x16xf32> to vector<8xf32>
    %29 = vector.shape_cast %28 : vector<8xf32> to vector<8x1xf32>
    %30 = vector.broadcast %29 : vector<8x1xf32> to vector<8x16xf32>
    %31 = arith.divf %27, %30 : vector<8x16xf32>
    %cst_12 = arith.constant dense<0.000000e+00> : vector<8x8xf32>
    %32 = tpu.matmul %31, %21, %cst_12 {dimension_numbers = #tpu.dot_dimension_numbers<[1], [0], [0], [1], [0, 0, 1, 1], [], []>} : vector<8x16xf32>, vector<16x8xf32>, vector<8x8xf32> -> vector<8x8xf32>
    %33 = vector.extract_strided_slice %2 {offsets = [0, 16], sizes = [8, 8], strides = [1, 1]} : vector<8x64xf32> to vector<8x8xf32>
    %34 = vector.extract_strided_slice %3 {offsets = [0, 16], sizes = [16, 8], strides = [1, 1]} : vector<16x64xf32> to vector<16x8xf32>
    %35 = vector.extract_strided_slice %4 {offsets = [0, 16], sizes = [16, 8], strides = [1, 1]} : vector<16x64xf32> to vector<16x8xf32>
    %cst_13 = arith.constant dense<0.000000e+00> : vector<8x16xf32>
    %36 = tpu.matmul %33, %34, %cst_13 {dimension_numbers = #tpu.dot_dimension_numbers<[1], [1], [0], [0], [0, 0, 1, 0], [], []>} : vector<8x8xf32>, vector<16x8xf32>, vector<8x16xf32> -> vector<8x16xf32>
    %cst_14 = arith.constant dense<0xFF800000> : vector<8xf32>
    %37 = vector.multi_reduction <maximumf>, %36, %cst_14 [1] : vector<8x16xf32> to vector<8xf32>
    %38 = vector.shape_cast %37 : vector<8xf32> to vector<8x1xf32>
    %39 = vector.broadcast %38 : vector<8x1xf32> to vector<8x16xf32>
    %40 = arith.subf %36, %39 : vector<8x16xf32>
    %41 = math.exp %40 : vector<8x16xf32>
    %cst_15 = arith.constant dense<0.000000e+00> : vector<8xf32>
    %42 = vector.multi_reduction <add>, %41, %cst_15 [1] : vector<8x16xf32> to vector<8xf32>
    %43 = vector.shape_cast %42 : vector<8xf32> to vector<8x1xf32>
    %44 = vector.broadcast %43 : vector<8x1xf32> to vector<8x16xf32>
    %45 = arith.divf %41, %44 : vector<8x16xf32>
    %cst_16 = arith.constant dense<0.000000e+00> : vector<8x8xf32>
    %46 = tpu.matmul %45, %35, %cst_16 {dimension_numbers = #tpu.dot_dimension_numbers<[1], [0], [0], [1], [0, 0, 1, 1], [], []>} : vector<8x16xf32>, vector<16x8xf32>, vector<8x8xf32> -> vector<8x8xf32>
    %47 = vector.extract_strided_slice %2 {offsets = [0, 24], sizes = [8, 8], strides = [1, 1]} : vector<8x64xf32> to vector<8x8xf32>
    %48 = vector.extract_strided_slice %3 {offsets = [0, 24], sizes = [16, 8], strides = [1, 1]} : vector<16x64xf32> to vector<16x8xf32>
    %49 = vector.extract_strided_slice %4 {offsets = [0, 24], sizes = [16, 8], strides = [1, 1]} : vector<16x64xf32> to vector<16x8xf32>
    %cst_17 = arith.constant dense<0.000000e+00> : vector<8x16xf32>
    %50 = tpu.matmul %47, %48, %cst_17 {dimension_numbers = #tpu.dot_dimension_numbers<[1], [1], [0], [0], [0, 0, 1, 0], [], []>} : vector<8x8xf32>, vector<16x8xf32>, vector<8x16xf32> -> vector<8x16xf32>
    %cst_18 = arith.constant dense<0xFF800000> : vector<8xf32>
    %51 = vector.multi_reduction <maximumf>, %50, %cst_18 [1] : vector<8x16xf32> to vector<8xf32>
    %52 = vector.shape_cast %51 : vector<8xf32> to vector<8x1xf32>
    %53 = vector.broadcast %52 : vector<8x1xf32> to vector<8x16xf32>
    %54 = arith.subf %50, %53 : vector<8x16xf32>
    %55 = math.exp %54 : vector<8x16xf32>
    %cst_19 = arith.constant dense<0.000000e+00> : vector<8xf32>
    %56 = vector.multi_reduction <add>, %55, %cst_19 [1] : vector<8x16xf32> to vector<8xf32>
    %57 = vector.shape_cast %56 : vector<8xf32> to vector<8x1xf32>
    %58 = vector.broadcast %57 : vector<8x1xf32> to vector<8x16xf32>
    %59 = arith.divf %55, %58 : vector<8x16xf32>
    %cst_20 = arith.constant dense<0.000000e+00> : vector<8x8xf32>
    %60 = tpu.matmul %59, %49, %cst_20 {dimension_numbers = #tpu.dot_dimension_numbers<[1], [0], [0], [1], [0, 0, 1, 1], [], []>} : vector<8x16xf32>, vector<16x8xf32>, vector<8x8xf32> -> vector<8x8xf32>
    %61 = vector.extract_strided_slice %2 {offsets = [0, 32], sizes = [8, 8], strides = [1, 1]} : vector<8x64xf32> to vector<8x8xf32>
    %62 = vector.extract_strided_slice %3 {offsets = [0, 32], sizes = [16, 8], strides = [1, 1]} : vector<16x64xf32> to vector<16x8xf32>
    %63 = vector.extract_strided_slice %4 {offsets = [0, 32], sizes = [16, 8], strides = [1, 1]} : vector<16x64xf32> to vector<16x8xf32>
    %cst_21 = arith.constant dense<0.000000e+00> : vector<8x16xf32>
    %64 = tpu.matmul %61, %62, %cst_21 {dimension_numbers = #tpu.dot_dimension_numbers<[1], [1], [0], [0], [0, 0, 1, 0], [], []>} : vector<8x8xf32>, vector<16x8xf32>, vector<8x16xf32> -> vector<8x16xf32>
    %cst_22 = arith.constant dense<0xFF800000> : vector<8xf32>
    %65 = vector.multi_reduction <maximumf>, %64, %cst_22 [1] : vector<8x16xf32> to vector<8xf32>
    %66 = vector.shape_cast %65 : vector<8xf32> to vector<8x1xf32>
    %67 = vector.broadcast %66 : vector<8x1xf32> to vector<8x16xf32>
    %68 = arith.subf %64, %67 : vector<8x16xf32>
    %69 = math.exp %68 : vector<8x16xf32>
    %cst_23 = arith.constant dense<0.000000e+00> : vector<8xf32>
    %70 = vector.multi_reduction <add>, %69, %cst_23 [1] : vector<8x16xf32> to vector<8xf32>
    %71 = vector.shape_cast %70 : vector<8xf32> to vector<8x1xf32>
    %72 = vector.broadcast %71 : vector<8x1xf32> to vector<8x16xf32>
    %73 = arith.divf %69, %72 : vector<8x16xf32>
    %cst_24 = arith.constant dense<0.000000e+00> : vector<8x8xf32>
    %74 = tpu.matmul %73, %63, %cst_24 {dimension_numbers = #tpu.dot_dimension_numbers<[1], [0], [0], [1], [0, 0, 1, 1], [], []>} : vector<8x16xf32>, vector<16x8xf32>, vector<8x8xf32> -> vector<8x8xf32>
    %75 = vector.extract_strided_slice %2 {offsets = [0, 40], sizes = [8, 8], strides = [1, 1]} : vector<8x64xf32> to vector<8x8xf32>
    %76 = vector.extract_strided_slice %3 {offsets = [0, 40], sizes = [16, 8], strides = [1, 1]} : vector<16x64xf32> to vector<16x8xf32>
    %77 = vector.extract_strided_slice %4 {offsets = [0, 40], sizes = [16, 8], strides = [1, 1]} : vector<16x64xf32> to vector<16x8xf32>
    %cst_25 = arith.constant dense<0.000000e+00> : vector<8x16xf32>
    %78 = tpu.matmul %75, %76, %cst_25 {dimension_numbers = #tpu.dot_dimension_numbers<[1], [1], [0], [0], [0, 0, 1, 0], [], []>} : vector<8x8xf32>, vector<16x8xf32>, vector<8x16xf32> -> vector<8x16xf32>
    %cst_26 = arith.constant dense<0xFF800000> : vector<8xf32>
    %79 = vector.multi_reduction <maximumf>, %78, %cst_26 [1] : vector<8x16xf32> to vector<8xf32>
    %80 = vector.shape_cast %79 : vector<8xf32> to vector<8x1xf32>
    %81 = vector.broadcast %80 : vector<8x1xf32> to vector<8x16xf32>
    %82 = arith.subf %78, %81 : vector<8x16xf32>
    %83 = math.exp %82 : vector<8x16xf32>
    %cst_27 = arith.constant dense<0.000000e+00> : vector<8xf32>
    %84 = vector.multi_reduction <add>, %83, %cst_27 [1] : vector<8x16xf32> to vector<8xf32>
    %85 = vector.shape_cast %84 : vector<8xf32> to vector<8x1xf32>
    %86 = vector.broadcast %85 : vector<8x1xf32> to vector<8x16xf32>
    %87 = arith.divf %83, %86 : vector<8x16xf32>
    %cst_28 = arith.constant dense<0.000000e+00> : vector<8x8xf32>
    %88 = tpu.matmul %87, %77, %cst_28 {dimension_numbers = #tpu.dot_dimension_numbers<[1], [0], [0], [1], [0, 0, 1, 1], [], []>} : vector<8x16xf32>, vector<16x8xf32>, vector<8x8xf32> -> vector<8x8xf32>
    %89 = vector.extract_strided_slice %2 {offsets = [0, 48], sizes = [8, 8], strides = [1, 1]} : vector<8x64xf32> to vector<8x8xf32>
    %90 = vector.extract_strided_slice %3 {offsets = [0, 48], sizes = [16, 8], strides = [1, 1]} : vector<16x64xf32> to vector<16x8xf32>
    %91 = vector.extract_strided_slice %4 {offsets = [0, 48], sizes = [16, 8], strides = [1, 1]} : vector<16x64xf32> to vector<16x8xf32>
    %cst_29 = arith.constant dense<0.000000e+00> : vector<8x16xf32>
    %92 = tpu.matmul %89, %90, %cst_29 {dimension_numbers = #tpu.dot_dimension_numbers<[1], [1], [0], [0], [0, 0, 1, 0], [], []>} : vector<8x8xf32>, vector<16x8xf32>, vector<8x16xf32> -> vector<8x16xf32>
    %cst_30 = arith.constant dense<0xFF800000> : vector<8xf32>
    %93 = vector.multi_reduction <maximumf>, %92, %cst_30 [1] : vector<8x16xf32> to vector<8xf32>
    %94 = vector.shape_cast %93 : vector<8xf32> to vector<8x1xf32>
    %95 = vector.broadcast %94 : vector<8x1xf32> to vector<8x16xf32>
    %96 = arith.subf %92, %95 : vector<8x16xf32>
    %97 = math.exp %96 : vector<8x16xf32>
    %cst_31 = arith.constant dense<0.000000e+00> : vector<8xf32>
    %98 = vector.multi_reduction <add>, %97, %cst_31 [1] : vector<8x16xf32> to vector<8xf32>
    %99 = vector.shape_cast %98 : vector<8xf32> to vector<8x1xf32>
    %100 = vector.broadcast %99 : vector<8x1xf32> to vector<8x16xf32>
    %101 = arith.divf %97, %100 : vector<8x16xf32>
    %cst_32 = arith.constant dense<0.000000e+00> : vector<8x8xf32>
    %102 = tpu.matmul %101, %91, %cst_32 {dimension_numbers = #tpu.dot_dimension_numbers<[1], [0], [0], [1], [0, 0, 1, 1], [], []>} : vector<8x16xf32>, vector<16x8xf32>, vector<8x8xf32> -> vector<8x8xf32>
    %103 = vector.extract_strided_slice %2 {offsets = [0, 56], sizes = [8, 8], strides = [1, 1]} : vector<8x64xf32> to vector<8x8xf32>
    %104 = vector.extract_strided_slice %3 {offsets = [0, 56], sizes = [16, 8], strides = [1, 1]} : vector<16x64xf32> to vector<16x8xf32>
    %105 = vector.extract_strided_slice %4 {offsets = [0, 56], sizes = [16, 8], strides = [1, 1]} : vector<16x64xf32> to vector<16x8xf32>
    %cst_33 = arith.constant dense<0.000000e+00> : vector<8x16xf32>
    %106 = tpu.matmul %103, %104, %cst_33 {dimension_numbers = #tpu.dot_dimension_numbers<[1], [1], [0], [0], [0, 0, 1, 0], [], []>} : vector<8x8xf32>, vector<16x8xf32>, vector<8x16xf32> -> vector<8x16xf32>
    %cst_34 = arith.constant dense<0xFF800000> : vector<8xf32>
    %107 = vector.multi_reduction <maximumf>, %106, %cst_34 [1] : vector<8x16xf32> to vector<8xf32>
    %108 = vector.shape_cast %107 : vector<8xf32> to vector<8x1xf32>
    %109 = vector.broadcast %108 : vector<8x1xf32> to vector<8x16xf32>
    %110 = arith.subf %106, %109 : vector<8x16xf32>
    %111 = math.exp %110 : vector<8x16xf32>
    %cst_35 = arith.constant dense<0.000000e+00> : vector<8xf32>
    %112 = vector.multi_reduction <add>, %111, %cst_35 [1] : vector<8x16xf32> to vector<8xf32>
    %113 = vector.shape_cast %112 : vector<8xf32> to vector<8x1xf32>
    %114 = vector.broadcast %113 : vector<8x1xf32> to vector<8x16xf32>
    %115 = arith.divf %111, %114 : vector<8x16xf32>
    %cst_36 = arith.constant dense<0.000000e+00> : vector<8x8xf32>
    %116 = tpu.matmul %115, %105, %cst_36 {dimension_numbers = #tpu.dot_dimension_numbers<[1], [0], [0], [1], [0, 0, 1, 1], [], []>} : vector<8x16xf32>, vector<16x8xf32>, vector<8x8xf32> -> vector<8x8xf32>
    %117 = tpu.concatenate %18, %32, %46, %60, %74, %88, %102, %116 in 1 : vector<8x8xf32>, vector<8x8xf32>, vector<8x8xf32>, vector<8x8xf32>, vector<8x8xf32>, vector<8x8xf32>, vector<8x8xf32>, vector<8x8xf32> -> vector<8x64xf32>
    %c0_37 = arith.constant 0 : index
    %c0_38 = arith.constant 0 : index
    %118 = vector.load %arg4[%c0_37, %c0_38] : memref<8x64xf32, #tpu.memory_space<vmem>>, vector<8x64xf32>
    tpu.vector_store %arg4[%c0_37, %c0_38], %117 {strides = array<i32>} : memref<8x64xf32, #tpu.memory_space<vmem>>, vector<8x64xf32>,
    return
  }
  func.func @transform_0(%arg0: i32) -> (i32, i32) {
    %c0_i32 = arith.constant 0 : i32
    %c0_i32_0 = arith.constant 0 : i32
    return %arg0, %c0_i32 : i32, i32
  }
  func.func @transform_1(%arg0: i32) -> (i32, i32) {
    %c0_i32 = arith.constant 0 : i32
    %c0_i32_0 = arith.constant 0 : i32
    %c0_i32_1 = arith.constant 0 : i32
    return %c0_i32, %c0_i32_0 : i32, i32
  }
  func.func @transform_2(%arg0: i32) -> (i32, i32) {
    %c0_i32 = arith.constant 0 : i32
    %c0_i32_0 = arith.constant 0 : i32
    %c0_i32_1 = arith.constant 0 : i32
    return %c0_i32, %c0_i32_0 : i32, i32
  }
  func.func @transform_3(%arg0: i32) -> (i32, i32) {
    %c0_i32 = arith.constant 0 : i32
    %c0_i32_0 = arith.constant 0 : i32
    return %arg0, %c0_i32 : i32, i32
  }
}

</mosaic_0001>

<bundles_post_ra>
// kernel: tpu_custom_call.1
= control target key start
LH: loop header
LB: loop body
LE: loop exit
PB: predicated region body
PF: predicated region fallthrough
CT: control target
= control target key end

     0   :  { %8 = vsyncpa [#allocation3], 0  ;;  %s2791_s0 = inlined_call_operand.hbm [shape: f32[16,64], index: 0, kind: input, shape index: {}]   ;;  %s2792_s1 = inlined_call_operand.hbm [shape: f32[16,64], index: 1, kind: input, shape index: {}]   ;;  %s2793_s2 = inlined_call_operand.hbm [shape: f32[16,64], index: 2, kind: input, shape index: {}]   ;;  %s2794_s3 = inlined_call_operand.hbm [shape: f32[16,64], index: 3, kind: output, shape index: {}]  }
   0x1   :  { %10 = vsyncpa [#allocation3 + $0x1], 0 }
   0x2   :  { %11 = vsyncpa [#allocation6], 0 }
   0x3   :  { %12 = vsyncpa [#allocation4], 0 }
   0x4   :  { %14 = vsyncpa [#allocation4 + $0x1], 0  ;;  %s2390_s12 = smov 0   ;;  %s2392_s13 = smov 0  }
   0x5   :  { %s2394_s14 = smov 0   ;;  %s2396_s15 = smov 0  }
   0x6 LB: > { %s2411_s16 = sadd.s32 4294967295, %s2345_s15   ;;  %s1737_s17 = sadd.s32 4294967294, %s2345_s15   ;;  %s2345_s15 = sphi %s2396_s15, %s2816_s15   ;;  %s2341_s14 = sphi %s2394_s14, %s2815_s14   ;;  %s2337_s13 = sphi %s2392_s13, %s2814_s13   ;;  %s2333_s12 = sphi %s2390_s12, %s2813_s12  }
   0x7   : > { %p40_p0 = scmp.ne.s32.totalorder %s2337_s13, %s2333_s12  ;;  %p2795_p1 = scmp.eq.s32.totalorder %s2411_s16, 0 }
   0x8   : > { %p112_p3 = scmp.eq.s32.totalorder %s1737_s17, 1  ;;  %p1738_p5 = scmp.ge.s32.totalorder %s2345_s15, 1 }
   0x9   : > { %p2420_p4 = por %p2795_p1, %p40_p0  ;;  %p119_p7 = scmp.lt.s32.totalorder %s2345_s15, 3 }
   0xa   : > { %p2425_p6 = por %p112_p3, %p40_p0  ;;  %s2347_s21 = smov [#allocation5]  }
   0xb   : > { %s2798_s18 = scalar_select %p2420_p4, 1, 0 }
   0xc   : > { %s2799_s19 = scalar_select %p2425_p6, 1, 0 }
   0xd   : > { %p2430_p8 = pnand %p1738_p5, %p119_p7  ;;  %s131_s22 = sshll.u32 %s2347_s21, 4  ;;  %s2434_s22 = int_to_ptr.vmem [resolvable:$true] %s131_s22 }
   0xe   : > { %s2348_s24 = smov [#allocation7]   ;;  %s2189_s28 = scalar_lea.hbm %s2792_s1, 256 }
   0xf   : > { %p2013_p9 = pneg %p2430_p8  ;;  %s144_s25 = sshll.u32 %s2348_s24, 4  ;;  %s2445_s25 = int_to_ptr.vmem [resolvable:$true] %s144_s25 }
  0x10   : > { %p2190_p12 = scmp.ne.s32.totalorder %s2792_s1, %s2189_s28  ;;  %p2196_p5 = scmp.lt.u32.totalorder %s2189_s28, %s2792_s1 }
  0x11   : > { %p2441_p11 = pnand %p2013_p9, %p2795_p1 }
  0x13   : > { %p2191_p13 = pneg %p2441_p11 }
  0x15   : > { %p2192_p0 = pnand %p2191_p13, %p2190_p12 }
  0x17   : > { %p2193_p3 = pneg %p2192_p0 }
  0x19   : > { %p2198_p7 = pnand %p2196_p5, %p2193_p3 }
  0x1b   : > { %2201 = shalt.err (!%p2198_p7)
}
  0x1c   : > { %s2202_s6 = scalar_lea.vmem %s2434_s22, 256  ;;  %p2210_p2 = scmp.lt.s32.totalorder %s2434_s22, %s2434_s22 }
  0x1d   : > { %p2203_p9 = scmp.ne.s32.totalorder %s2434_s22, %s2202_s6  ;;  %p2211_p12 = scmp.lt.s32.totalorder %s2202_s6, %s2202_s6 }
  0x1f   : > { %p2205_p10 = pnand %p2203_p9, %p2191_p13  ;;  %p2212_p0 = por %p2211_p12, %p2210_p2 }
  0x21   : > { %p2206_p1 = pneg %p2205_p10 }
  0x23   : > { %p2213_p6 = pnand %p2212_p0, %p2206_p1 }
  0x25   : > { %2216 = shalt.err (!%p2213_p6)
}
  0x26   : > { %s2349_s7 = smov 128   ;;  %s2350_s8 = smov 8  }
  0x27   : > { %2016 = dma.hbm_to_vmem [thread:$0]  (!%p2441_p11), %s2792_s1, 256, %s2434_s22, [#allocation6], %s2349_s7, %s2349_s7, %s2350_s8  }
  0x28   : > { %s2217_s21 = scalar_lea.hbm %s2793_s2, 256 }
  0x29   : > { %p2218_p2 = scmp.ne.s32.totalorder %s2793_s2, %s2217_s21  ;;  %p2224_p10 = scmp.lt.u32.totalorder %s2217_s21, %s2793_s2 }
  0x2b   : > { %p2220_p1 = pnand %p2218_p2, %p2191_p13 }
  0x2d   : > { %p2221_p6 = pneg %p2220_p1 }
  0x2f   : > { %p2226_p3 = pnand %p2224_p10, %p2221_p6 }
  0x31   : > { %2229 = shalt.err (!%p2226_p3)
}
  0x32   : > { %s2230_s22 = scalar_lea.vmem %s2445_s25, 256  ;;  %p2238_p12 = scmp.lt.s32.totalorder %s2445_s25, %s2445_s25 }
  0x33   : > { %p2231_p5 = scmp.ne.s32.totalorder %s2445_s25, %s2230_s22  ;;  %p2239_p0 = scmp.lt.s32.totalorder %s2230_s22, %s2230_s22 }
  0x35   : > { %p2233_p7 = pnand %p2231_p5, %p2191_p13  ;;  %p2240_p2 = por %p2239_p0, %p2238_p12 }
  0x37   : > { %p2234_p9 = pneg %p2233_p7 }
  0x39   : > { %p2241_p1 = pnand %p2240_p2, %p2234_p9 }
  0x3b   : > { %2244 = shalt.err (!%p2241_p1)
}
  0x3c   : > { %2019 = dma.hbm_to_vmem [thread:$0]  (!%p2441_p11), %s2793_s2, 256, %s2445_s25, [#allocation6], %s2349_s7, %s2349_s7, %s2350_s8  }
  0x3d   : > { %s2500_s4 = sadd.s32 1, %s2345_s15   ;;  %s27_s23 = sadd.s32 1, %s2341_s14 }
  0x3e   : > { %s24_s5 = ssub.s32 %s2345_s15, %s2500_s4  ;;  %p34_p13 = scmp.ne.s32.totalorder %s2341_s14, %s2337_s13 }
  0x3f   : > { %p25_p6 = scmp.eq.s32.totalorder %s24_s5, 0  ;;  %p35_p10 = scmp.eq.s32.totalorder %s2345_s15, 0 }
  0x40   : > { %p2802_p3 = scmp.eq.s32.totalorder %s2411_s16, 1  ;;  %p2030_p7 = scmp.lt.s32.totalorder %s2345_s15, 2 }
  0x41   : > { %s2516_s9 = scalar_select %p25_p6, %s2341_s14, %s27_s23  }
  0x42   : > { %p2510_p5 = por %p2802_p3, %p34_p13  ;;  %p36_p9 = por %p35_p10, %p34_p13 }
  0x43   : > { %s158_s10 = sand.u32 1, %s2341_s14   ;;  %s1743_s25 = sshll.u32 %s2345_s15, 7 }
  0x44   : > { %s2803_s6 = scalar_select %p2510_p5, 1, 0 }
  0x45   : > { %s1742_s11 = sshll.u32 %s158_s10, 3  ;;  %s2523_s17 = scalar_lea.hbm %s2791_s0, %s1743_s25 }
  0x46   : > { %s162_s21 = scalar_lea.vmem [#allocation2], %s1742_s11  ;;  %p2527_p11 = pnand %p2030_p7, %p36_p9 }
  0x47   : > { %s169_s24 = sshll.u32 %s162_s21, 4  ;;  %s159_s27 = scalar_lea.sflag [#allocation3], %s158_s10  ;;  %s2525_s24 = int_to_ptr.vmem [resolvable:$true] %s169_s24 }
  0x48   : > { %s2245_s28 = scalar_lea.hbm %s2523_s17, 128  ;;  %p2247_p0 = pneg %p2527_p11 }
  0x49   : > { %p2246_p12 = scmp.ne.s32.totalorder %s2523_s17, %s2245_s28  ;;  %s2250_s30 = scalar_lea.hbm %s2791_s0, 256 }
  0x4a   : > { %p2251_p13 = scmp.lt.u32.totalorder %s2523_s17, %s2791_s0  ;;  %p2252_p6 = scmp.lt.u32.totalorder %s2250_s30, %s2245_s28 }
  0x4b   : > { %p2248_p2 = pnand %p2247_p0, %p2246_p12  ;;  %p2254_p3 = scmp.lt.u32.totalorder %s2245_s28, %s2523_s17 }
  0x4c   : > { %p2253_p10 = por %p2252_p6, %p2251_p13 }
  0x4d   : > { %p2249_p1 = pneg %p2248_p2 }
  0x4e   : > { %p2255_p7 = por %p2254_p3, %p2253_p10 }
  0x50   : > { %p2256_p9 = pnand %p2255_p7, %p2249_p1 }
  0x52   : > { %2259 = shalt.err (!%p2256_p9)
}
  0x53   : > { %s2260_s10 = scalar_lea.vmem %s2525_s24, 128  ;;  %s2351_s11 = smov [#allocation2]  }
  0x54   : > { %p2261_p12 = scmp.ne.s32.totalorder %s2525_s24, %s2260_s10  ;;  %s2265_s25 = sshll.u32 %s2351_s11, 4  ;;  %s2266_s25 = int_to_ptr.vmem [resolvable:$false] %s2265_s25 }
  0x55   : > { %s2267_s7 = scalar_lea.vmem %s2266_s25, 256  ;;  %p2268_p4 = scmp.lt.s32.totalorder %s2525_s24, %s2266_s25 }
  0x56   : > { %p2263_p2 = pnand %p2261_p12, %p2247_p0  ;;  %p2269_p13 = scmp.lt.s32.totalorder %s2267_s7, %s2260_s10 }
  0x58   : > { %p2264_p5 = pneg %p2263_p2  ;;  %p2270_p6 = por %p2269_p13, %p2268_p4 }
  0x5a   : > { %p2271_p10 = pnand %p2270_p6, %p2264_p5 }
  0x5c   : > { %2274 = shalt.err (!%p2271_p10)
}
  0x5d   : > { %2023 = dma.hbm_to_vmem [thread:$0]  (!%p2527_p11), %s2523_s17, 128, %s2525_s24, %s159_s27  }
  0x5e   : > { %178 = sbr.rel (%p2430_p8) target bundleno = 4721 (0x1271), region = 32  ;;  %s2559_s8 = sand.u32 (!%p2430_p8), 1, %s2337_s13  }
  0x5f   : > { %s1745_s21 = sshll.u32 (!%p2430_p8), %s2559_s8, 3  ;;  %s181_s28 = scalar_lea.sflag (!%p2430_p8), [#allocation3], %s2559_s8 }
  0x60   : > { %s184_s22 = scalar_lea.vmem (!%p2430_p8), [#allocation2], %s1745_s21  ;;  %p2805_p4 = scmp.ne.s32.totalorder (!%p2430_p8), %s2798_s18, 0 }
  0x65   : > { %2320 = dma.done.wait (%p2805_p4), %s181_s28, 128  }
  0x66   : > { %2322 = vsyncadd (%p2805_p4), %s181_s28, 4294967168  ;;  %p2806_p5 = scmp.eq.s32.totalorder %s2411_s16, 0 }
  0x68   : > { %2324 = dma.done.wait (%p2806_p5), [#allocation6], 512   ;;  %p2807_p8 = pmov %p2806_p5 }
  0x69   : > { %v2352_v0 = vmov 0.0|0.0   ;;  %vm2353_vm0 = vmmov 0   ;;  %v2354_v1 = vmov 0.0   ;;  %vm221_vm1 = vcmask 64512   ;;  %v217_v2 = vld [vmem:[#allocation5] sm:$0xff]  ;;  %v218_v3 = vld [vmem:[#allocation5 + $0x8] sm:$0xff] }
  0x6a   : > { %2326 = vsyncadd (%p2807_p8), [#allocation6], 4294966784  ;;  %1945 = vmatprep.subr.bf16.mxu0 %v2352_v0  ;;  %1837 = vmatprep.mubr.msk.f32.mxu0 %vm2353_vm0, %v2354_v1  ;;  %v1946_v5 = vpack.c.bf16 %v218_v3, %v217_v2  ;;  %v215_v6 = vld [vmem:[%s184_s22] sm:$0xff]  ;;  %vm301_vm3 = vcmask 130048   ;;  %v2595_v11 = vpack.i.bf16 %v218_v3, %v217_v2  ;;  %s2355_s18 = smov 120   ;;  %s2356_s20 = smov 112  }
  0x6b   : > { %1949 = vmatprep.subr.bf16.mxu1 %v2352_v0  ;;  %1844 = vmatprep.mubr.msk.f32.mxu1 %vm2353_vm0, %v2354_v1  ;;  %vm2581_vm2 = vmpackc.low %vm221_vm1, %vm221_vm1  ;;  %v2588_v7 = vmul.f32 0.35355338, %v215_v6  ;;  %v219_v17 = vld [vmem:[#allocation7] sm:$0xff]  ;;  %v220_v18 = vld [vmem:[#allocation7 + $0x8] sm:$0xff]  ;;  %s2357_s17 = smov 104   ;;  %s2358_s24 = smov 96  }
  0x6c   : > { %1948 = vmatpush3.bf16.xpose.msk.msra.mxu0 %vm2581_vm2, %v1946_v5  ;;  %2088 = vrot.lane.b32.xlu1 %v2595_v11, %s2355_s18  ;;  %v1950_v19 = vpack.c.bf16 %v220_v18, %v219_v17  ;;  %v2615_v33 = vpack.i.bf16 %v220_v18, %v219_v17  ;;  %s2359_s26 = smov 88   ;;  %s2360_s27 = smov 80   ;;  %vm1622_vm4 = vcmask 195584   ;;  %vm1624_vm5 = vcmask 261120  }
  0x6d   : > { %1956 = vmatprep.subr.bf16.mxu0 %v2352_v0  ;;  %s2361_s29 = smov 72   ;;  %s2362_s30 = smov 8   ;;  %vm1626_vm6 = vcmask 326656   ;;  %vm1628_vm7 = vcmask 392192   ;;  %vm1630_vm8 = vcmask 457728   ;;  %vm1632_vm9 = vcmask 523264  }
  0x6e   : > { %1951 = vmatpush3.bf16.msra.mxu1 %v1950_v19  ;;  %s2363_s23 = smov 16   ;;  %s2364_s5 = smov 24  }
  0x6f   : > { %1952 = vmatprep.subr.bf16.mxu1 %v2352_v0  ;;  %s2365_s10 = smov 40   ;;  %s2366_s11 = smov 48  }
  0x70   : > { %386 = vrot.lane.b32.xlu1 %v2588_v7, %s2355_s18  ;;  %s2367_s25 = smov 32   ;;  %s2368_s7 = smov 56  }
  0x71   : > { %s1782_s28 = sshll.u32 %s2411_s16, 7  ;;  %s214_s22 = scalar_lea.vmem [#allocation8], %s1745_s21 }
  0x72   : > { %s1635_s16 = scalar_lea.sflag [#allocation4], %s2559_s8  ;;  %p2810_p0 = scmp.ne.s32.totalorder %s2803_s6, 0 }
  0x73   : > { %1838 = vmatmul.mubr.msk.f32.vlgmr.msra.gmra.mrb[0].mxu0 %vm221_vm1, %v2588_v7  ;;  %s2369_s21 = smov [#allocation8]  }
  0x74   : > { %1858 = vmatprep.mubr.msk.f32.mxu0 %vm2353_vm0, %v2354_v1 }
  0xde   : > { %v2089_v21 = vpop.permute.xlu1 %2088 }
  0xdf   : > { %v2091_v22 = vunpack.i.h.bf16 %v2089_v21  ;;  %v2090_v23 = vunpack.i.l.bf16 %v2089_v21 }
  0xe1   : > { %v1953_v25 = vpack.c.bf16 %v2091_v22, %v2090_v23 }
  0xe2   : > { %v387_v27 = vpop.permute.xlu1 %386 }
 0x146   : > { %v297_v8 = vpop.f32.mrb[0].mxu0 }
 0x147   : > { %v1839_v9 = vpop.f32.mrb[1].mxu0  ;;  %v302_v10 = vsel %vm301_vm3, %v297_v8, -inf }
 0x148   : > { %303 = vmax.xlane.f32.xlu0 %v302_v10 }
 0x1d5   : > { %v304_v12 = vpop.xlane.xlu0 %303 }
 0x1d6   : > { %v305_v13 = vsub.f32 %v297_v8, %v304_v12 }
 0x1d8   : > { %v306_v14 = vmul.f32 1.442695, %v305_v13 }
 0x1da   : > { %2157 = vpow2.f32 %v306_v14 }
 0x1e4   : > { %v2158_v15 = vpop.eup %2157 }
 0x1e5   : > { %v308_v16 = vsel %vm301_vm3, %v2158_v15, 0.0 }
 0x1e6   : > { %309 = vadd.xlane.f32.xlu0 %v308_v16 }
 0x273   : > { %v310_v20 = vpop.xlane.xlu0 %309 }
 0x274   : > { %2159 = vrcp.f32 %v310_v20 }
 0x27e   : > { %v2160_v24 = vpop.eup %2159 }
 0x27f   : > { %v312_v26 = vmul.f32 %v2160_v24, %v2158_v15 }
 0x281   : > { %1845 = vmatmul.mubr.msk.f32.vlgmr.msra.gmra.mrb[0].mxu1 %vm301_vm3, %v312_v26 }
 0x282   : > { %1955 = vmatpush3.bf16.xpose.msk.msra.mxu1 %vm2581_vm2, %v1953_v25  ;;  %1851 = vmatprep.mubr.msk.f32.mxu1 %vm2353_vm0, %v2354_v1 }
 0x283   : > { %1963 = vmatprep.subr.bf16.mxu1 %v2352_v0 }
 0x289   : > { %1852 = vmatmul.mubr.msk.f32.vlgmr.msra.gmra.mrb[2].mxu1 %vm221_vm1, %v387_v27 }
 0x28a   : > { %1872 = vmatprep.mubr.msk.f32.mxu1 %vm2353_vm0, %v2354_v1 }
 0x354   : > { %v2612_v28 = vpop.f32.mrb[0].mxu1 }
 0x355   : > { %v1846_v29 = vpop.f32.mrb[1].mxu1 }
 0x35c   : > { %v464_v30 = vpop.f32.mrb[2].mxu1 }
 0x35d   : > { %v1853_v31 = vpop.f32.mrb[3].mxu1  ;;  %v468_v32 = vsel %vm301_vm3, %v464_v30, -inf }
 0x35e   : > { %469 = vmax.xlane.f32.xlu0 %v468_v32 }
 0x374   : > { %2093 = vrot.lane.b32.xlu0 %v2615_v33, %s2355_s18  ;;  %s1648_s18 = sshll.u32 %s214_s22, 4  ;;  %s2749_s18 = int_to_ptr.vmem [resolvable:$true] %s1648_s18 }
 0x378   : > { %2098 = vrot.lane.b32.xlu0 %v2595_v11, %s2356_s20 }
 0x37c   : > { %560 = vrot.lane.b32.xlu0 %v2588_v7, %s2356_s20 }
 0x3eb   : > { %v470_v34 = vpop.xlane.xlu0 %469 }
 0x3ec   : > { %v471_v35 = vsub.f32 %v464_v30, %v470_v34 }
 0x3ee   : > { %v472_v36 = vmul.f32 1.442695, %v471_v35 }
 0x3ef   : > { %v2094_v39 = vpop.permute.xlu0 %2093 }
 0x3f0   : > { %2161 = vpow2.f32 %v472_v36  ;;  %v2096_v40 = vunpack.i.h.bf16 %v2094_v39  ;;  %v2095_v41 = vunpack.i.l.bf16 %v2094_v39 }
 0x3f2   : > { %v1957_v42 = vpack.c.bf16 %v2096_v40, %v2095_v41 }
 0x3f3   : > { %v2099_v44 = vpop.permute.xlu0 %2098 }
 0x3f4   : > { %1958 = vmatpush3.bf16.msra.mxu0 %v1957_v42  ;;  %v2101_v45 = vunpack.i.h.bf16 %v2099_v44  ;;  %v2100_v46 = vunpack.i.l.bf16 %v2099_v44 }
 0x3f5   : > { %1959 = vmatprep.subr.bf16.mxu0 %v2352_v0 }
 0x3f6   : > { %v1960_v48 = vpack.c.bf16 %v2101_v45, %v2100_v46 }
 0x3f7   : > { %v561_v50 = vpop.permute.xlu0 %560 }
 0x3fa   : > { %v2162_v37 = vpop.eup %2161 }
 0x3fb   : > { %v474_v38 = vsel %vm301_vm3, %v2162_v37, 0.0 }
 0x3fc   : > { %475 = vadd.xlane.f32.xlu1 %v474_v38 }
 0x40d   : > { %2103 = vrot.lane.b32.xlu1 %v2615_v33, %s2356_s20 }
 0x411   : > { %2108 = vrot.lane.b32.xlu1 %v2595_v11, %s2357_s17 }
 0x489   : > { %v476_v43 = vpop.xlane.xlu1 %475 }
 0x48a   : > { %2163 = vrcp.f32 %v476_v43 }
 0x48d   : > { %v2104_v56 = vpop.permute.xlu1 %2103 }
 0x48e   : > { %v2106_v57 = vunpack.i.h.bf16 %v2104_v56  ;;  %v2105_v58 = vunpack.i.l.bf16 %v2104_v56 }
 0x490   : > { %v1964_v59 = vpack.c.bf16 %v2106_v57, %v2105_v58 }
 0x491   : > { %v2109_v3 = vpop.permute.xlu1 %2108 }
 0x492   : > { %1965 = vmatpush3.bf16.msra.mxu1 %v1964_v59  ;;  %v2111_v6 = vunpack.i.h.bf16 %v2109_v3  ;;  %v2110_v8 = vunpack.i.l.bf16 %v2109_v3 }
 0x493   : > { %1966 = vmatprep.subr.bf16.mxu1 %v2352_v0 }
 0x494   : > { %v2164_v47 = vpop.eup %2163  ;;  %v1967_v12 = vpack.c.bf16 %v2111_v6, %v2110_v8 }
 0x495   : > { %v478_v49 = vmul.f32 %v2164_v47, %v2162_v37 }
 0x497   : > { %1859 = vmatmul.mubr.msk.f32.vlgmr.msra.gmra.mrb[2].mxu0 %vm301_vm3, %v478_v49 }
 0x498   : > { %1962 = vmatpush3.bf16.xpose.msk.msra.mxu0 %vm2581_vm2, %v1960_v48  ;;  %1865 = vmatprep.mubr.msk.f32.mxu0 %vm2353_vm0, %v2354_v1 }
 0x499   : > { %1970 = vmatprep.subr.bf16.mxu0 %v2352_v0 }
 0x49f   : > { %1866 = vmatmul.mubr.msk.f32.vlgmr.msra.gmra.mrb[4].mxu0 %vm221_vm1, %v561_v50 }
 0x4a0   : > { %1886 = vmatprep.mubr.msk.f32.mxu0 %vm2353_vm0, %v2354_v1 }
 0x56a   : > { %v2638_v51 = vpop.f32.mrb[2].mxu0 }
 0x56b   : > { %v1860_v52 = vpop.f32.mrb[3].mxu0 }
 0x572   : > { %v638_v53 = vpop.f32.mrb[4].mxu0 }
 0x573   : > { %v1867_v54 = vpop.f32.mrb[5].mxu0  ;;  %v642_v55 = vsel %vm301_vm3, %v638_v53, -inf }
 0x574   : > { %643 = vmax.xlane.f32.xlu0 %v642_v55 }
 0x601   : > { %v644_v60 = vpop.xlane.xlu0 %643 }
 0x602   : > { %v645_v61 = vsub.f32 %v638_v53, %v644_v60 }
 0x604   : > { %v646_v62 = vmul.f32 1.442695, %v645_v61 }
 0x606   : > { %2165 = vpow2.f32 %v646_v62 }
 0x610   : > { %v2166_v63 = vpop.eup %2165 }
 0x611   : > { %v648_v2 = vsel %vm301_vm3, %v2166_v63, 0.0 }
 0x612   : > { %649 = vadd.xlane.f32.xlu1 %v648_v2 }
 0x623   : > { %732 = vrot.lane.b32.xlu1 %v2588_v7, %s2357_s17 }
 0x69f   : > { %v650_v5 = vpop.xlane.xlu1 %649 }
 0x6a0   : > { %2167 = vrcp.f32 %v650_v5 }
 0x6a3   : > { %v733_v13 = vpop.permute.xlu1 %732 }
 0x6aa   : > { %v2168_v9 = vpop.eup %2167 }
 0x6ab   : > { %v652_v10 = vmul.f32 %v2168_v9, %v2166_v63 }
 0x6ad   : > { %1873 = vmatmul.mubr.msk.f32.vlgmr.msra.gmra.mrb[4].mxu1 %vm301_vm3, %v652_v10 }
 0x6ae   : > { %1969 = vmatpush3.bf16.xpose.msk.msra.mxu1 %vm2581_vm2, %v1967_v12  ;;  %1879 = vmatprep.mubr.msk.f32.mxu1 %vm2353_vm0, %v2354_v1 }
 0x6af   : > { %1977 = vmatprep.subr.bf16.mxu1 %v2352_v0 }
 0x6b5   : > { %1880 = vmatmul.mubr.msk.f32.vlgmr.msra.gmra.mrb[6].mxu1 %vm221_vm1, %v733_v13 }
 0x6b6   : > { %1900 = vmatprep.mubr.msk.f32.mxu1 %vm2353_vm0, %v2354_v1 }
 0x780   : > { %v2654_v14 = vpop.f32.mrb[4].mxu1 }
 0x781   : > { %v1874_v15 = vpop.f32.mrb[5].mxu1 }
 0x788   : > { %v810_v16 = vpop.f32.mrb[6].mxu1 }
 0x789   : > { %v1881_v17 = vpop.f32.mrb[7].mxu1  ;;  %v814_v18 = vsel %vm301_vm3, %v810_v16, -inf }
 0x78a   : > { %815 = vmax.xlane.f32.xlu0 %v814_v18 }
 0x7a0   : > { %2113 = vrot.lane.b32.xlu0 %v2615_v33, %s2357_s17 }
 0x7a4   : > { %2118 = vrot.lane.b32.xlu0 %v2595_v11, %s2358_s24 }
 0x7a8   : > { %904 = vrot.lane.b32.xlu0 %v2588_v7, %s2358_s24 }
 0x817   : > { %v816_v19 = vpop.xlane.xlu0 %815 }
 0x818   : > { %v817_v20 = vsub.f32 %v810_v16, %v816_v19 }
 0x81a   : > { %v818_v21 = vmul.f32 1.442695, %v817_v20 }
 0x81b   : > { %v2114_v24 = vpop.permute.xlu0 %2113 }
 0x81c   : > { %2169 = vpow2.f32 %v818_v21  ;;  %v2116_v25 = vunpack.i.h.bf16 %v2114_v24  ;;  %v2115_v26 = vunpack.i.l.bf16 %v2114_v24 }
 0x81e   : > { %v1971_v27 = vpack.c.bf16 %v2116_v25, %v2115_v26 }
 0x81f   : > { %v2119_v30 = vpop.permute.xlu0 %2118 }
 0x820   : > { %1972 = vmatpush3.bf16.msra.mxu0 %v1971_v27  ;;  %v2121_v31 = vunpack.i.h.bf16 %v2119_v30  ;;  %v2120_v32 = vunpack.i.l.bf16 %v2119_v30 }
 0x821   : > { %1973 = vmatprep.subr.bf16.mxu0 %v2352_v0 }
 0x822   : > { %v1974_v35 = vpack.c.bf16 %v2121_v31, %v2120_v32 }
 0x823   : > { %v905_v37 = vpop.permute.xlu0 %904 }
 0x826   : > { %v2170_v22 = vpop.eup %2169 }
 0x827   : > { %v820_v23 = vsel %vm301_vm3, %v2170_v22, 0.0 }
 0x828   : > { %821 = vadd.xlane.f32.xlu1 %v820_v23 }
 0x839   : > { %2123 = vrot.lane.b32.xlu1 %v2615_v33, %s2358_s24  ;;  %s2747_s24 = scalar_lea.hbm %s2794_s3, %s1782_s28 }
 0x83d   : > { %2128 = vrot.lane.b32.xlu1 %v2595_v11, %s2359_s26 }
 0x8b5   : > { %v822_v29 = vpop.xlane.xlu1 %821 }
 0x8b6   : > { %2171 = vrcp.f32 %v822_v29 }
 0x8b9   : > { %v2124_v43 = vpop.permute.xlu1 %2123 }
 0x8ba   : > { %v2126_v44 = vunpack.i.h.bf16 %v2124_v43  ;;  %v2125_v45 = vunpack.i.l.bf16 %v2124_v43 }
 0x8bc   : > { %v1978_v46 = vpack.c.bf16 %v2126_v44, %v2125_v45 }
 0x8bd   : > { %v2129_v53 = vpop.permute.xlu1 %2128 }
 0x8be   : > { %1979 = vmatpush3.bf16.msra.mxu1 %v1978_v46  ;;  %v2131_v55 = vunpack.i.h.bf16 %v2129_v53  ;;  %v2130_v56 = vunpack.i.l.bf16 %v2129_v53 }
 0x8bf   : > { %1980 = vmatprep.subr.bf16.mxu1 %v2352_v0 }
 0x8c0   : > { %v2172_v34 = vpop.eup %2171  ;;  %v1981_v59 = vpack.c.bf16 %v2131_v55, %v2130_v56 }
 0x8c1   : > { %v824_v36 = vmul.f32 %v2172_v34, %v2170_v22 }
 0x8c3   : > { %1887 = vmatmul.mubr.msk.f32.vlgmr.msra.gmra.mrb[6].mxu0 %vm301_vm3, %v824_v36 }
 0x8c4   : > { %1976 = vmatpush3.bf16.xpose.msk.msra.mxu0 %vm2581_vm2, %v1974_v35  ;;  %1893 = vmatprep.mubr.msk.f32.mxu0 %vm2353_vm0, %v2354_v1 }
 0x8c5   : > { %1984 = vmatprep.subr.bf16.mxu0 %v2352_v0 }
 0x8cb   : > { %1894 = vmatmul.mubr.msk.f32.vlgmr.msra.gmra.mrb[8].mxu0 %vm221_vm1, %v905_v37 }
 0x8cc   : > { %1914 = vmatprep.mubr.msk.f32.mxu0 %vm2353_vm0, %v2354_v1 }
 0x996   : > { %v2678_v38 = vpop.f32.mrb[6].mxu0 }
 0x997   : > { %v1888_v39 = vpop.f32.mrb[7].mxu0 }
 0x99e   : > { %v982_v40 = vpop.f32.mrb[8].mxu0 }
 0x99f   : > { %v1895_v41 = vpop.f32.mrb[9].mxu0  ;;  %v986_v42 = vsel %vm301_vm3, %v982_v40, -inf }
 0x9a0   : > { %987 = vmax.xlane.f32.xlu0 %v986_v42 }
 0xa2d   : > { %v988_v47 = vpop.xlane.xlu0 %987 }
 0xa2e   : > { %v989_v48 = vsub.f32 %v982_v40, %v988_v47 }
 0xa30   : > { %v990_v49 = vmul.f32 1.442695, %v989_v48 }
 0xa32   : > { %2173 = vpow2.f32 %v990_v49 }
 0xa3c   : > { %v2174_v50 = vpop.eup %2173 }
 0xa3d   : > { %v992_v52 = vsel %vm301_vm3, %v2174_v50, 0.0 }
 0xa3e   : > { %993 = vadd.xlane.f32.xlu1 %v992_v52 }
 0xa4f   : > { %1076 = vrot.lane.b32.xlu1 %v2588_v7, %s2359_s26 }
 0xacb   : > { %v994_v54 = vpop.xlane.xlu1 %993 }
 0xacc   : > { %2175 = vrcp.f32 %v994_v54 }
 0xacf   : > { %v1077_v60 = vpop.permute.xlu1 %1076 }
 0xad6   : > { %v2176_v57 = vpop.eup %2175 }
 0xad7   : > { %v996_v58 = vmul.f32 %v2176_v57, %v2174_v50 }
 0xad9   : > { %1901 = vmatmul.mubr.msk.f32.vlgmr.msra.gmra.mrb[8].mxu1 %vm301_vm3, %v996_v58 }
 0xada   : > { %1983 = vmatpush3.bf16.xpose.msk.msra.mxu1 %vm2581_vm2, %v1981_v59  ;;  %1907 = vmatprep.mubr.msk.f32.mxu1 %vm2353_vm0, %v2354_v1 }
 0xadb   : > { %1991 = vmatprep.subr.bf16.mxu1 %v2352_v0 }
 0xae1   : > { %1908 = vmatmul.mubr.msk.f32.vlgmr.msra.gmra.mrb[10].mxu1 %vm221_vm1, %v1077_v60 }
 0xae2   : > { %1928 = vmatprep.mubr.msk.f32.mxu1 %vm2353_vm0, %v2354_v1 }
 0xbac   : > { %v2694_v61 = vpop.f32.mrb[8].mxu1 }
 0xbad   : > { %v1902_v62 = vpop.f32.mrb[9].mxu1 }
 0xbb4   : > { %v1154_v63 = vpop.f32.mrb[10].mxu1 }
 0xbb5   : > { %v1909_v2 = vpop.f32.mrb[11].mxu1  ;;  %v1158_v3 = vsel %vm301_vm3, %v1154_v63, -inf }
 0xbb6   : > { %1159 = vmax.xlane.f32.xlu0 %v1158_v3 }
 0xbcc   : > { %2133 = vrot.lane.b32.xlu0 %v2615_v33, %s2359_s26  ;;  %s2275_s26 = scalar_lea.vmem %s2749_s18, 128 }
 0xbcd   : > { %p2276_p11 = scmp.ne.s32.totalorder %s2749_s18, %s2275_s26 }
 0xbcf   : > { %p2277_p1 = pnand %p2276_p11, %p2810_p0 }
 0xbd0   : > { %2138 = vrot.lane.b32.xlu0 %v2595_v11, %s2360_s27 }
 0xbd1   : > { %p2278_p3 = pneg %p2277_p1 }
 0xbd4   : > { %1248 = vrot.lane.b32.xlu0 %v2588_v7, %s2360_s27 }
 0xc43   : > { %v1160_v5 = vpop.xlane.xlu0 %1159 }
 0xc44   : > { %v1161_v6 = vsub.f32 %v1154_v63, %v1160_v5 }
 0xc46   : > { %v1162_v8 = vmul.f32 1.442695, %v1161_v6 }
 0xc47   : > { %v2134_v12 = vpop.permute.xlu0 %2133 }
 0xc48   : > { %2177 = vpow2.f32 %v1162_v8  ;;  %v2136_v13 = vunpack.i.h.bf16 %v2134_v12  ;;  %v2135_v15 = vunpack.i.l.bf16 %v2134_v12 }
 0xc4a   : > { %v1985_v16 = vpack.c.bf16 %v2136_v13, %v2135_v15 }
 0xc4b   : > { %v2139_v18 = vpop.permute.xlu0 %2138 }
 0xc4c   : > { %1986 = vmatpush3.bf16.msra.mxu0 %v1985_v16  ;;  %v2141_v19 = vunpack.i.h.bf16 %v2139_v18  ;;  %v2140_v20 = vunpack.i.l.bf16 %v2139_v18 }
 0xc4d   : > { %1987 = vmatprep.subr.bf16.mxu0 %v2352_v0 }
 0xc4e   : > { %v1988_v22 = vpack.c.bf16 %v2141_v19, %v2140_v20 }
 0xc4f   : > { %v1249_v24 = vpop.permute.xlu0 %1248 }
 0xc52   : > { %v2178_v9 = vpop.eup %2177 }
 0xc53   : > { %v1164_v10 = vsel %vm301_vm3, %v2178_v9, 0.0 }
 0xc54   : > { %1165 = vadd.xlane.f32.xlu1 %v1164_v10 }
 0xc65   : > { %2143 = vrot.lane.b32.xlu1 %v2615_v33, %s2360_s27  ;;  %s2279_s27 = sshll.u32 %s2369_s21, 4  ;;  %s2280_s27 = int_to_ptr.vmem [resolvable:$false] %s2279_s27 }
 0xc66   : > { %p2282_p7 = scmp.lt.s32.totalorder %s2749_s18, %s2280_s27 }
 0xc69   : > { %2148 = vrot.lane.b32.xlu1 %v2595_v11, %s2361_s29 }
 0xce1   : > { %v1166_v17 = vpop.xlane.xlu1 %1165 }
 0xce2   : > { %2179 = vrcp.f32 %v1166_v17 }
 0xce5   : > { %v2144_v31 = vpop.permute.xlu1 %2143 }
 0xce6   : > { %v2146_v32 = vunpack.i.h.bf16 %v2144_v31  ;;  %v2145_v34 = vunpack.i.l.bf16 %v2144_v31 }
 0xce8   : > { %v1992_v35 = vpack.c.bf16 %v2146_v32, %v2145_v34 }
 0xce9   : > { %v2149_v41 = vpop.permute.xlu1 %2148 }
 0xcea   : > { %1993 = vmatpush3.bf16.msra.mxu1 %v1992_v35  ;;  %v2151_v43 = vunpack.i.h.bf16 %v2149_v41  ;;  %v2150_v44 = vunpack.i.l.bf16 %v2149_v41 }
 0xceb   : > { %1994 = vmatprep.subr.bf16.mxu1 %v2352_v0 }
 0xcec   : > { %v2180_v21 = vpop.eup %2179  ;;  %v1995_v47 = vpack.c.bf16 %v2151_v43, %v2150_v44 }
 0xced   : > { %v1168_v23 = vmul.f32 %v2180_v21, %v2178_v9 }
 0xcef   : > { %1915 = vmatmul.mubr.msk.f32.vlgmr.msra.gmra.mrb[10].mxu0 %vm301_vm3, %v1168_v23 }
 0xcf0   : > { %1990 = vmatpush3.bf16.xpose.msk.msra.mxu0 %vm2581_vm2, %v1988_v22  ;;  %1921 = vmatprep.mubr.msk.f32.mxu0 %vm2353_vm0, %v2354_v1 }
 0xcf1   : > { %1998 = vmatprep.subr.bf16.mxu0 %v2352_v0 }
 0xcf7   : > { %1922 = vmatmul.mubr.msk.f32.vlgmr.msra.gmra.mrb[12].mxu0 %vm221_vm1, %v1249_v24 }
 0xcf8   : > { %1942 = vmatprep.mubr.msk.f32.mxu0 %vm2353_vm0, %v2354_v1 }
 0xdc2   : > { %v1244_v25 = vpop.f32.mrb[10].mxu0 }
 0xdc3   : > { %v1916_v26 = vpop.f32.mrb[11].mxu0 }
 0xdca   : > { %v1326_v27 = vpop.f32.mrb[12].mxu0 }
 0xdcb   : > { %v1923_v29 = vpop.f32.mrb[13].mxu0  ;;  %v1330_v30 = vsel %vm301_vm3, %v1326_v27, -inf }
 0xdcc   : > { %1331 = vmax.xlane.f32.xlu0 %v1330_v30 }
 0xe59   : > { %v1332_v36 = vpop.xlane.xlu0 %1331 }
 0xe5a   : > { %v1333_v37 = vsub.f32 %v1326_v27, %v1332_v36 }
 0xe5c   : > { %v1334_v39 = vmul.f32 1.442695, %v1333_v37 }
 0xe5e   : > { %2181 = vpow2.f32 %v1334_v39 }
 0xe68   : > { %v2182_v40 = vpop.eup %2181 }
 0xe69   : > { %v1336_v11 = vsel %vm301_vm3, %v2182_v40, 0.0 }
 0xe6a   : > { %1337 = vadd.xlane.f32.xlu1 %v1336_v11 }
 0xe7b   : > { %1420 = vrot.lane.b32.xlu1 %v2588_v7, %s2361_s29 }
 0xef7   : > { %v1338_v42 = vpop.xlane.xlu1 %1337 }
 0xef8   : > { %2183 = vrcp.f32 %v1338_v42 }
 0xefb   : > { %v1421_v0 = vpop.permute.xlu1 %1420 }
 0xf02   : > { %v2184_v45 = vpop.eup %2183 }
 0xf03   : > { %v1340_v46 = vmul.f32 %v2184_v45, %v2182_v40 }
 0xf05   : > { %1929 = vmatmul.mubr.msk.f32.vlgmr.msra.gmra.mrb[12].mxu1 %vm301_vm3, %v1340_v46 }
 0xf06   : > { %1997 = vmatpush3.bf16.xpose.msk.msra.mxu1 %vm2581_vm2, %v1995_v47  ;;  %1935 = vmatprep.mubr.msk.f32.mxu1 %vm2353_vm0, %v2354_v1 }
 0xf0d   : > { %1936 = vmatmul.mubr.msk.f32.vlgmr.msra.gmra.mrb[14].mxu1 %vm221_vm1, %v1421_v0 }
 0xfd8   : > { %v1416_v7 = vpop.f32.mrb[12].mxu1 }
 0xfd9   : > { %v1930_v48 = vpop.f32.mrb[13].mxu1 }
 0xfe0   : > { %v1498_v49 = vpop.f32.mrb[14].mxu1 }
 0xfe1   : > { %v1937_v50 = vpop.f32.mrb[15].mxu1  ;;  %v1502_v52 = vsel %vm301_vm3, %v1498_v49, -inf }
 0xfe2   : > { %1503 = vmax.xlane.f32.xlu0 %v1502_v52 }
 0xff8   : > { %2153 = vrot.lane.b32.xlu0 %v2615_v33, %s2361_s29  ;;  %s2281_s29 = scalar_lea.vmem %s2280_s27, 256 }
 0xff9   : > { %p2283_p9 = scmp.lt.s32.totalorder %s2281_s29, %s2275_s26 }
 0xffb   : > { %p2284_p12 = por %p2283_p9, %p2282_p7 }
 0xffc   : > { %1593 = vrot.lane.b32.xlu0 %v2638_v51, %s2362_s30 }
 0xffd   : > { %p2285_p2 = pnand %p2284_p12, %p2278_p3 }
0x1000   : > { %1597 = vrot.lane.b32.xlu0 %v2654_v14, %s2363_s23 }
0x1004   : > { %1601 = vrot.lane.b32.xlu0 %v2678_v38, %s2364_s5 }
0x1008   : > { %1609 = vrot.lane.b32.xlu0 %v1244_v25, %s2365_s10 }
0x100c   : > { %1613 = vrot.lane.b32.xlu0 %v1416_v7, %s2366_s11 }
0x106f   : > { %v1504_v1 = vpop.xlane.xlu0 %1503 }
0x1070   : > { %v1505_v4 = vsub.f32 %v1498_v49, %v1504_v1 }
0x1072   : > { %v1506_v53 = vmul.f32 1.442695, %v1505_v4 }
0x1073   : > { %v2154_v54 = vpop.permute.xlu0 %2153 }
0x1074   : > { %2185 = vpow2.f32 %v1506_v53  ;;  %v2156_v55 = vunpack.i.h.bf16 %v2154_v54  ;;  %v2155_v33 = vunpack.i.l.bf16 %v2154_v54 }
0x1076   : > { %v1999_v56 = vpack.c.bf16 %v2156_v55, %v2155_v33 }
0x1077   : > { %v1594_v62 = vpop.permute.xlu0 %1593 }
0x1078   : > { %2000 = vmatpush3.bf16.msra.mxu0 %v1999_v56 }
0x107b   : > { %v1598_v63 = vpop.permute.xlu0 %1597 }
0x107e   : > { %v2186_v51 = vpop.eup %2185 }
0x107f   : > { %v1508_v57 = vsel %vm301_vm3, %v2186_v51, 0.0  ;;  %v1602_v2 = vpop.permute.xlu0 %1601 }
0x1080   : > { %1509 = vadd.xlane.f32.xlu1 %v1508_v57 }
0x1083   : > { %v1610_v3 = vpop.permute.xlu0 %1609 }
0x1087   : > { %v1614_v10 = vpop.permute.xlu0 %1613 }
0x1091   : > { %1605 = vrot.lane.b32.xlu1 %v2694_v61, %s2367_s25  ;;  %v1620_v61 = vsel %vm221_vm1, %v2612_v28, %v1594_v62 }
0x1092   : > { %v1621_v6 = vsel %vm301_vm3, %v1620_v61, %v1598_v63 }
0x1093   : > { %v1623_v8 = vsel %vm1622_vm4, %v1621_v6, %v1602_v2 }
0x110d   : > { %v1510_v14 = vpop.xlane.xlu1 %1509 }
0x110e   : > { %2187 = vrcp.f32 %v1510_v14 }
0x1111   : > { %v1606_v5 = vpop.permute.xlu1 %1605 }
0x1112   : > { %v1625_v9 = vsel %vm1624_vm5, %v1623_v8, %v1606_v5 }
0x1113   : > { %v1627_v12 = vsel %vm1626_vm6, %v1625_v9, %v1610_v3 }
0x1114   : > { %v1629_v13 = vsel %vm1628_vm7, %v1627_v12, %v1614_v10 }
0x1118   : > { %v2188_v38 = vpop.eup %2187 }
0x1119   : > { %v1512_v58 = vmul.f32 %v2188_v38, %v2186_v51 }
0x111b   : > { %1943 = vmatmul.mubr.msk.f32.vlgmr.msra.gmra.mrb[14].mxu0 %vm301_vm3, %v1512_v58 }
0x11ee   : > { %v1588_v59 = vpop.f32.mrb[14].mxu0 }
0x11ef   : > { %1617 = vrot.lane.b32.xlu0 %v1588_v59, %s2368_s7  ;;  %v1944_v60 = vpop.f32.mrb[15].mxu0 }
0x1261   : > { %v1618_v28 = vpop.permute.xlu0 %1617 }
0x1262   : > { %v1631_v15 = vsel %vm1630_vm8, %v1629_v13, %v1618_v28 }
0x1263   : > { %1633 = vst.msk [vmem:[%s214_s22] sm:$0xff] %vm1632_vm9, %v1631_v15 }
0x1264   : > { %2288 = shalt.err (!%p2285_p2)
}
0x1265   : > { %s2289_s8 = scalar_lea.hbm %s2747_s24, 128  ;;  %s2293_s5 = scalar_lea.hbm %s2794_s3, 256 }
0x1266   : > { %p2290_p13 = scmp.ne.s32.totalorder %s2747_s24, %s2289_s8  ;;  %p2294_p4 = scmp.lt.u32.totalorder %s2747_s24, %s2794_s3 }
0x1267   : > { %p2295_p5 = scmp.lt.u32.totalorder %s2293_s5, %s2289_s8  ;;  %p2297_p11 = scmp.lt.u32.totalorder %s2289_s8, %s2747_s24 }
0x1268   : > { %p2291_p6 = pnand %p2290_p13, %p2810_p0 }
0x1269   : > { %p2296_p8 = por %p2295_p5, %p2294_p4 }
0x126a   : > { %p2292_p10 = pneg %p2291_p6 }
0x126b   : > { %p2298_p1 = por %p2297_p11, %p2296_p8 }
0x126d   : > { %p2299_p3 = pnand %p2298_p1, %p2292_p10 }
0x126f   : > { %2302 = shalt.err (!%p2299_p3)
}
0x1270   : > { %2011 = dma.vmem_to_hbm [thread:$0]  (%p2810_p0), %s2749_s18, 128, %s2747_s24, %s1635_s16  }
0x1271 PF: > { %s1660_s25 = sand.u32 1, %s2333_s12   ;;  %p2811_p7 = scmp.ne.s32.totalorder %s2799_s19, 0 }
0x1272   : > { %p2812_p9 = scmp.ge.s32.totalorder %s2345_s15, 2  ;;  %s1661_s7 = scalar_lea.sflag [#allocation4], %s1660_s25 }
0x1274   : > { %p2025_p12 = pnand %p2812_p9, %p2811_p7 }
0x1276   : > { %2328 = dma.done.wait (!%p2025_p12), %s1661_s7, 128  }
0x1277   : > { %2330 = vsyncadd (!%p2025_p12), %s1661_s7, 4294967168  ;;  %p17_p2 = scmp.ge.s32.totalorder %s2500_s4, 4   ;;  %s2813_s12 = smov %s2337_s13 }
0x1278   : > { %s2814_s13 = smov %s2341_s14  ;;  %s2815_s14 = smov %s2516_s9 }
0x1279   : > { %s2816_s15 = smov %s2500_s4  ;;  %19 = sbr.rel (!%p17_p2) target bundleno = 6 (0x6), region = 85 }
0x1280   :  { %1666 = vsyncpa [#allocation3], 1 }
0x1281   :  { %1668 = vsyncpa [#allocation3 + $0x1], 1 }
0x1282   :  { %1669 = vsyncpa [#allocation6], 1 }
0x1283   :  { %1670 = vsyncpa [#allocation4], 1 }
0x1284   :  { %1672 = vsyncpa [#allocation4 + $0x1], 1 }

</bundles_post_ra>
